<compile_context>
chip_gen: v7x
topology: tpu7x:2x2x1
jax: 0.10.0
libtpu: 0.0.40
codegen_flags: <defaults>
</compile_context>

<pallas_src>
import functools

import jax
import jax.numpy as jnp
from jax.experimental import pallas as pl
from jax.experimental.pallas import tpu as pltpu


def relu_conv1x1_kernel(x_ref, w_ref, o_ref, *, matmul_dtype):
    # x_ref: (C_in, T_hw)    one spatial tile of one batch image (resident
    #                        across the C_out grid axis: its index_map does
    #                        not depend on that axis, so no re-DMA).
    # w_ref: (T_co, C_in)    one C_out tile of the weight.
    # o_ref: (T_co, T_hw)
    x = jnp.maximum(x_ref[...], 0.0)            # fused ReLU (VPU)
    w = w_ref[...]
    if matmul_dtype is not None:                # optional bf16 operands (v6e/v7x)
        x = x.astype(matmul_dtype)
        w = w.astype(matmul_dtype)
    o_ref[...] = jnp.dot(                       # MXU matmul, f32 accumulation
        w, x, preferred_element_type=jnp.float32
    ).astype(o_ref.dtype)


def _pick_cout_tile(c_out):
    # Prefer 2 C_out tiles: non-degenerate grid -> pipelining + 2-TC sharding.
    # Tile must be sublane-aligned (multiple of 8); fall back to the full axis.
    if c_out >= 16 and c_out % 16 == 0:
        return c_out // 2
    return c_out


def relu_conv2d_1x1(x_nchw, weight_oi, *, tile_hw=1024, matmul_dtype=None):
    """ReLU followed by a 1x1 conv (no bias) in NCHW.

    x_nchw:       (N, C_in, H, W)
    weight_oi:    (C_out, C_in)   (PyTorch Conv2d weight squeezed over the 1x1 kernel)
    matmul_dtype: e.g. jnp.bfloat16 to cast matmul operands (f32 accumulation
                  kept).  Default None = use the input dtype (exact f32 path).
    returns:      (N, C_out, H, W)
    """
    n, c_in, h, w = x_nchw.shape
    c_out = weight_oi.shape[0]
    hw = h * w
    itemsize = jnp.dtype(x_nchw.dtype).itemsize

    # Pure reshape (no data movement): NCHW -> (N, C_in, H*W).
    x3 = x_nchw.reshape(n, c_in, hw)

    # ---- C_out tiling (new grid axis) -------------------------------------
    t_co = _pick_cout_tile(c_out)
    n_co = c_out // t_co

    # ---- spatial (lane) tiling ---------------------------------------------
    # Small H*W: one full-width block (allowed even if not a 128-multiple;
    # for the module shape hw = 196 so there is no ragged tail at all).
    # Large H*W: lane-dense 128-multiple tiles, shrunk to fit a conservative
    # VMEM budget (double-buffered x + w + out) so we stay inside the 32 MiB
    # scoped default on every generation, including v7x (64 MiB physical).
    if hw <= tile_hw:
        t_hw = hw
    else:
        t_hw = max(128, (tile_hw // 128) * 128)
        vmem_budget = 24 << 20  # bytes, leaves headroom under the 32 MiB default

        def working_set(thw):
            return 2 * itemsize * (c_in * thw + t_co * c_in + t_co * thw)

        while t_hw > 128 and working_set(t_hw) > vmem_budget:
            t_hw -= 128

    grid = (n, pl.cdiv(hw, t_hw), n_co)  # C_out axis innermost -> x stays resident

    # Advisory cost so XLA schedules this small custom call sensibly.
    cost = pl.CostEstimate(
        flops=2 * n * hw * c_in * c_out,
        transcendentals=0,
        bytes_accessed=(x3.size + weight_oi.size + n * c_out * hw) * itemsize,
    )

    out3 = pl.pallas_call(
        functools.partial(relu_conv1x1_kernel, matmul_dtype=matmul_dtype),
        out_shape=jax.ShapeDtypeStruct((n, c_out, hw), x_nchw.dtype),
        grid=grid,
        in_specs=[
            # x: batch squeezed; index_map independent of the C_out axis so the
            # ReLU input tile is DMA'd once and reused across C_out steps.
            pl.BlockSpec((None, c_in, t_hw), lambda b, j, co: (b, 0, j)),
            # weight: one C_out tile per innermost step (DMA overlapped with
            # the previous tile's matmul by the default double-buffering).
            pl.BlockSpec((t_co, c_in), lambda b, j, co: (co, 0)),
        ],
        out_specs=pl.BlockSpec((None, t_co, t_hw), lambda b, j, co: (b, co, j)),
        compiler_params=pltpu.CompilerParams(
            # All three axes are fully independent -> megacore sharding on v7x.
            dimension_semantics=("parallel", "parallel", "parallel"),
        ),
        cost_estimate=cost,
    )(x3, weight_oi)

    # Pure reshape back: (N, C_out, H*W) -> (N, C_out, H, W).
    return out3.reshape(n, c_out, h, w)


if __name__ == "__main__":
    # Shapes implied by the module: input (1, 288, 14, 14),
    # Conv2d(288, 288, kernel_size=1, stride=1, bias=False).
    key = jax.random.PRNGKey(0)
    kx, kw = jax.random.split(key)

    x = jax.random.normal(kx, (1, 288, 14, 14), dtype=jnp.float32)
    weight = jax.random.normal(kw, (288, 288), dtype=jnp.float32) * 0.05

    out = jax.block_until_ready(relu_conv2d_1x1(x, weight))

    # Pure-JAX reference: ReLU followed by 1x1 conv (no bias).
    ref = jnp.einsum("nchw,oc->nohw", jnp.maximum(x, 0.0), weight)
    assert out.shape == (1, 288, 14, 14)
    assert jnp.allclose(out, ref, atol=1e-3, rtol=1e-3)

    print("KERNEL_OK")
</pallas_src>

<mosaic_0001>
module attributes {stable_mosaic.version = 11 : i64} {
  func.func @relu_conv1x1_kernel(%arg0: i32, %arg1: i32, %arg2: i32, %arg3: memref<1x288x196xf32, #tpu.memory_space<vmem>>, %arg4: memref<144x288xf32, #tpu.memory_space<vmem>>, %arg5: memref<1x144x196xf32, #tpu.memory_space<vmem>>) attributes {dimension_semantics = [#tpu.dimension_semantics<parallel>, #tpu.dimension_semantics<parallel>, #tpu.dimension_semantics<parallel>], iteration_bounds = array<i64: 1, 1, 2>, scalar_prefetch = 0 : i64, scratch_operands = 0 : i64, tpu.core_type = #tpu.core_type<tc>, window_params = [{transform_indices = @transform_0, window_bounds = array<i64: 1, 288, 196>}, {transform_indices = @transform_1, window_bounds = array<i64: 144, 288>}, {transform_indices = @transform_2, window_bounds = array<i64: 1, 144, 196>}]} {
    %c0 = arith.constant 0 : index
    %c0_0 = arith.constant 0 : index
    %c0_1 = arith.constant 0 : index
    %0 = vector.load %arg3[%c0, %c0_0, %c0_1] : memref<1x288x196xf32, #tpu.memory_space<vmem>>, vector<1x288x196xf32>
    %1 = vector.shape_cast %0 : vector<1x288x196xf32> to vector<288x196xf32>
    %cst = arith.constant 0.000000e+00 : f32
    %2 = vector.broadcast %cst : f32 to vector<288x196xf32>
    %3 = arith.maximumf %1, %2 : vector<288x196xf32>
    %c0_2 = arith.constant 0 : index
    %c0_3 = arith.constant 0 : index
    %4 = vector.load %arg4[%c0_2, %c0_3] : memref<144x288xf32, #tpu.memory_space<vmem>>, vector<144x288xf32>
    %cst_4 = arith.constant dense<0.000000e+00> : vector<144x196xf32>
    %5 = tpu.matmul %4, %3, %cst_4 {dimension_numbers = #tpu.dot_dimension_numbers<[1], [0], [0], [1], [0, 0, 1, 1], [], []>} : vector<144x288xf32>, vector<288x196xf32>, vector<144x196xf32> -> vector<144x196xf32>
    %c0_5 = arith.constant 0 : index
    %c0_6 = arith.constant 0 : index
    %c0_7 = arith.constant 0 : index
    %6 = vector.load %arg5[%c0_5, %c0_6, %c0_7] : memref<1x144x196xf32, #tpu.memory_space<vmem>>, vector<1x144x196xf32>
    %7 = vector.shape_cast %6 : vector<1x144x196xf32> to vector<144x196xf32>
    %8 = vector.shape_cast %5 : vector<144x196xf32> to vector<1x144x196xf32>
    tpu.vector_store %arg5[%c0_5, %c0_6, %c0_7], %8 {strides = array<i32>} : memref<1x144x196xf32, #tpu.memory_space<vmem>>, vector<1x144x196xf32>,
    return
  }
  func.func @transform_0(%arg0: i32, %arg1: i32, %arg2: i32) -> (i32, i32, i32) {
    %c0_i32 = arith.constant 0 : i32
    %c0_i32_0 = arith.constant 0 : i32
    return %arg0, %c0_i32, %arg1 : i32, i32, i32
  }
  func.func @transform_1(%arg0: i32, %arg1: i32, %arg2: i32) -> (i32, i32) {
    %c0_i32 = arith.constant 0 : i32
    %c0_i32_0 = arith.constant 0 : i32
    return %arg2, %c0_i32 : i32, i32
  }
  func.func @transform_2(%arg0: i32, %arg1: i32, %arg2: i32) -> (i32, i32, i32) {
    %c0_i32 = arith.constant 0 : i32
    return %arg0, %arg2, %arg1 : i32, i32, i32
  }
}

</mosaic_0001>

<bundles_post_ra>
// kernel: tpu_custom_call.1
= control target key start
LH: loop header
LB: loop body
LE: loop exit
PB: predicated region body
PF: predicated region fallthrough
CT: control target
= control target key end

     0   :  { %7 = vsyncpa [#allocation3], 0  ;;  %s1774_s0 = inlined_call_operand.hbm [shape: f32[1,288,196], index: 0, kind: input, shape index: {}]   ;;  %s1775_s1 = inlined_call_operand.hbm [shape: f32[288,288], index: 1, kind: input, shape index: {}]   ;;  %s1776_s2 = inlined_call_operand.hbm [shape: f32[1,288,196], index: 2, kind: output, shape index: {}]  }
   0x1   :  { %8 = vsyncpa [#allocation6], 0 }
   0x2   :  { %10 = vsyncpa [#allocation6 + $0x1], 0 }
   0x3   :  { %11 = vsyncpa [#allocation4], 0 }
   0x4   :  { %13 = vsyncpa [#allocation4 + $0x1], 0  ;;  %s1375_s9 = smov 0   ;;  %s1377_s10 = smov 0  }
   0x5   :  { %s1379_s11 = smov 0   ;;  %s1381_s12 = smov 0  }
   0x6   :  { %s1383_s13 = smov 0   ;;  %s1385_s14 = smov 0  }
   0x7 LB: > { %s978_s15 = sadd.s32 4294967295, %s1348_s14   ;;  %s979_s16 = sadd.s32 4294967294, %s1348_s14   ;;  %s1348_s14 = sphi %s1385_s14, %s19_s14   ;;  %s1344_s13 = sphi %s1383_s13, %s1799_s13   ;;  %s1340_s12 = sphi %s1381_s12, %s1798_s12   ;;  %s1336_s11 = sphi %s1379_s11, %s1797_s11   ;;  %s1332_s10 = sphi %s1377_s10, %s1796_s10   ;;  %s1328_s9 = sphi %s1375_s9, %s1795_s9  }
   0x8   : > { %p86_p0 = scmp.ne.s32.totalorder %s1332_s10, %s1328_s9  ;;  %p1409_p1 = scmp.eq.s32.totalorder %s978_s15, 0 }
   0x9   : > { %p1413_p2 = scmp.eq.s32.totalorder %s978_s15, 1  ;;  %p120_p3 = scmp.eq.s32.totalorder %s979_s16, 1 }
   0xa   : > { %s1781_s17 = scalar_select %p1409_p1, 1, 0 }
   0xb   : > { %s1782_s18 = scalar_select %p1413_p2, 1, 0 }
   0xc   : > { %p1419_p4 = por %p1409_p1, %p86_p0  ;;  %p980_p5 = scmp.ge.s32.totalorder %s1348_s14, 1 }
   0xd   : > { %p1424_p6 = por %p120_p3, %p86_p0  ;;  %p127_p7 = scmp.lt.s32.totalorder %s1348_s14, 3 }
   0xe   : > { %s1783_s19 = scalar_select %p1419_p4, 1, 0 }
   0xf   : > { %s1784_s20 = scalar_select %p1424_p6, 1, 0 }
  0x10   : > { %p1429_p8 = pnand %p980_p5, %p127_p7  ;;  %s1350_s22 = smov [#allocation2]  }
  0x11   : > { %s144_s23 = sshll.u32 %s1350_s22, 4  ;;  %s31_s25 = sadd.s32 1, %s1344_s13  ;;  %s145_s23 = int_to_ptr.vmem [resolvable:$true] %s144_s23 }
  0x12   : > { %s1785_s21 = scalar_select %p1429_p8, 1, 0 }
  0x13   : > { %p1131_p9 = pneg %p1429_p8  ;;  %s1204_s28 = scalar_lea.hbm %s1774_s0, 9216 }
  0x14   : > { %p1205_p12 = scmp.ne.s32.totalorder %s1774_s0, %s1204_s28  ;;  %p1211_p5 = scmp.lt.u32.totalorder %s1204_s28, %s1774_s0 }
  0x15   : > { %p1438_p11 = pnand %p1131_p9, %p1409_p1 }
  0x17   : > { %p1206_p13 = pneg %p1438_p11 }
  0x19   : > { %p1207_p0 = pnand %p1206_p13, %p1205_p12 }
  0x1b   : > { %p1208_p3 = pneg %p1207_p0 }
  0x1d   : > { %p1213_p7 = pnand %p1211_p5, %p1208_p3 }
  0x1f   : > { %1216 = shalt.err (!%p1213_p7)
}
  0x20   : > { %s1217_s5 = scalar_lea.vmem %s145_s23, 9216  ;;  %p1225_p4 = scmp.lt.s32.totalorder %s145_s23, %s145_s23 }
  0x21   : > { %p1218_p9 = scmp.ne.s32.totalorder %s145_s23, %s1217_s5  ;;  %p1226_p1 = scmp.lt.s32.totalorder %s1217_s5, %s1217_s5 }
  0x23   : > { %p1220_p10 = pnand %p1218_p9, %p1206_p13  ;;  %p1227_p8 = por %p1226_p1, %p1225_p4 }
  0x25   : > { %p1221_p6 = pneg %p1220_p10 }
  0x27   : > { %p1228_p2 = pnand %p1227_p8, %p1221_p6 }
  0x29   : > { %1231 = shalt.err (!%p1228_p2)
}
  0x2a   : > { %s1351_s6 = smov 256   ;;  %s1352_s7 = smov 16  }
  0x2b   : > { %1134 = dma.hbm_to_vmem [thread:$0]  (!%p1438_p11), %s1774_s0, 9216, %s145_s23, [#allocation3], %s1351_s6, %s1351_s6, %s1352_s7  }
  0x2c   : > { %p32_p1 = scmp.ge.s32.totalorder %s31_s25, 2  ;;  %s73_s16 = sadd.s32 1, %s1336_s11 }
  0x2d   : > { %p80_p2 = scmp.ne.s32.totalorder %s1336_s11, %s1332_s10  ;;  %p81_p4 = scmp.eq.s32.totalorder %s1348_s14, 0 }
  0x2e   : > { %s1801_s25 = smov (%p32_p1, %s31_s25), 0  ;;  %p1787_p8 = scmp.ne.s32.totalorder %s1782_s18, 0 }
  0x2f   : > { %p82_p6 = por %p81_p4, %p80_p2  ;;  %s70_s26 = ssub.s32 %s1344_s13, %s1801_s25 }
  0x30   : > { %p1467_p10 = por %p1787_p8, %p80_p2  ;;  %p1144_p12 = scmp.lt.s32.totalorder %s1348_s14, 2 }
  0x31   : > { %p71_p13 = scmp.eq.s32.totalorder %s70_s26, 0  ;;  %s158_s24 = sand.u32 1, %s1336_s11  }
  0x32   : > { %s1119_s27 = smul.u32 432, %s158_s24  ;;  %p1481_p11 = pnand %p1144_p12, %p82_p6 }
  0x33   : > { %s1476_s28 = scalar_select %p71_p13, %s1336_s11, %s73_s16  }
  0x34   : > { %s1145_s23 = smul.u32 6912, %s1344_s13  ;;  %s162_s29 = scalar_lea.vmem [#allocation5], %s1119_s27 }
  0x35   : > { %s170_s30 = sshll.u32 %s162_s29, 4  ;;  %s1490_s6 = scalar_lea.sflag [#allocation6], %s158_s24  ;;  %s1479_s30 = int_to_ptr.vmem [resolvable:$true] %s170_s30 }
  0x36   : > { %s1488_s5 = scalar_lea.hbm %s1775_s1, %s1145_s23  ;;  %p1234_p3 = pneg %p1481_p11 }
  0x37   : > { %s1232_s7 = scalar_lea.hbm %s1488_s5, 6912  ;;  %s1237_s16 = scalar_lea.hbm %s1775_s1, 13824 }
  0x38   : > { %p1233_p0 = scmp.ne.s32.totalorder %s1488_s5, %s1232_s7  ;;  %p1238_p9 = scmp.lt.u32.totalorder %s1488_s5, %s1775_s1 }
  0x39   : > { %p1239_p1 = scmp.lt.u32.totalorder %s1237_s16, %s1232_s7  ;;  %p1241_p4 = scmp.lt.u32.totalorder %s1232_s7, %s1488_s5 }
  0x3a   : > { %p1235_p5 = pnand %p1234_p3, %p1233_p0 }
  0x3b   : > { %p1240_p2 = por %p1239_p1, %p1238_p9 }
  0x3c   : > { %p1236_p7 = pneg %p1235_p5 }
  0x3d   : > { %p1242_p6 = por %p1241_p4, %p1240_p2 }
  0x3f   : > { %p1243_p8 = pnand %p1242_p6, %p1236_p7 }
  0x41   : > { %1246 = shalt.err (!%p1243_p8)
}
  0x42   : > { %s1247_s24 = scalar_lea.vmem %s1479_s30, 6912  ;;  %s1353_s23 = smov [#allocation5]  }
  0x43   : > { %p1248_p12 = scmp.ne.s32.totalorder %s1479_s30, %s1247_s24  ;;  %s1252_s29 = sshll.u32 %s1353_s23, 4  ;;  %s1253_s29 = int_to_ptr.vmem [resolvable:$false] %s1252_s29 }
  0x44   : > { %s1254_s18 = scalar_lea.vmem %s1253_s29, 13824  ;;  %p1255_p5 = scmp.lt.s32.totalorder %s1479_s30, %s1253_s29 }
  0x45   : > { %p1250_p13 = pnand %p1248_p12, %p1234_p3  ;;  %p1256_p9 = scmp.lt.s32.totalorder %s1254_s18, %s1247_s24 }
  0x47   : > { %p1251_p0 = pneg %p1250_p13  ;;  %p1257_p1 = por %p1256_p9, %p1255_p5 }
  0x49   : > { %p1258_p2 = pnand %p1257_p1, %p1251_p0 }
  0x4b   : > { %1261 = shalt.err (!%p1258_p2)
}
  0x4c   : > { %s1354_s4 = smov 384   ;;  %s1355_s7 = smov 24  }
  0x4d   : > { %1138 = dma.hbm_to_vmem [thread:$0]  (!%p1481_p11), %s1488_s5, 6912, %s1479_s30, %s1490_s6, %s1354_s4, %s1354_s4, %s1355_s7  }
  0x4e   : > { %p1790_p3 = scmp.ne.s32.totalorder %s1785_s21, 0 }
  0x4f   : > { %p1791_p7 = scmp.ne.s32.totalorder (!%p1790_p3), %s1781_s17, 0 }
  0x50   : > { %182 = sbr.rel (%p1790_p3) target bundleno = 460 (0x1cc), region = 28 }
  0x57   : > { %1315 = dma.done.wait (%p1791_p7), [#allocation3], 9216  }
  0x58   : > { %1317 = vsyncadd (%p1791_p7), [#allocation3], 4294958080  ;;  %s1525_s8 = sand.u32 1, %s1332_s10   ;;  %p1792_p11 = scmp.ne.s32.totalorder %s1783_s19, 0 }
  0x59   : > { %s1121_s15 = smul.u32 432, %s1525_s8  ;;  %s189_s16 = scalar_lea.sflag [#allocation6], %s1525_s8 }
  0x5b   : > { %s1529_s26 = scalar_lea.vmem [#allocation5], %s1121_s15 }
  0x5c   : > { %1319 = dma.done.wait (%p1792_p11), %s189_s16, 6912  }
  0x5d   : > { %1321 = vsyncadd (%p1792_p11), %s189_s16, 4294960384  ;;  %v1356_v0 = vmov 0.0   ;;  %v218_v1 = vld [vmem:[#allocation2 + $0x8] sm:$0xff]  ;;  %v220_v2 = vld [vmem:[#allocation2 + $0x18] sm:$0xff]  ;;  %vm415_vm0 = vcmask 261120   ;;  %s1122_s17 = smul.u32 288, %s1525_s8 }
  0x5e   : > { %707 = vmatprep.mubr.f32.mxu0 %v1356_v0  ;;  %v217_v3 = vld [vmem:[#allocation2] sm:$0xff]  ;;  %v290_v4 = vmax.f32 %v218_v1, 0.0  ;;  %v292_v5 = vmax.f32 %v220_v2, 0.0  ;;  %v219_v6 = vld [vmem:[#allocation2 + $0x10] sm:$0xff]  ;;  %v222_v8 = vld [vmem:[#allocation2 + $0x28] sm:$0xff]  ;;  %vm817_vm1 = vcmask 556032  }
  0x5f   : > { %v289_v7 = vmax.f32 %v217_v3, 0.0  ;;  %v224_v9 = vld [vmem:[#allocation2 + $0x38] sm:$0xff]  ;;  %v291_v10 = vmax.f32 %v219_v6, 0.0  ;;  %v294_v11 = vmax.f32 %v222_v8, 0.0  ;;  %v221_v13 = vld [vmem:[#allocation2 + $0x20] sm:$0xff]  ;;  %v223_v14 = vld [vmem:[#allocation2 + $0x30] sm:$0xff] }
  0x60   : > { %v296_v12 = vmax.f32 %v224_v9, 0.0  ;;  %v226_v15 = vld [vmem:[#allocation2 + $0x48] sm:$0xff]  ;;  %v1011_v16 = vpack.c.bf16 %v292_v5, %v290_v4  ;;  %v293_v17 = vmax.f32 %v221_v13, 0.0  ;;  %v295_v18 = vmax.f32 %v223_v14, 0.0  ;;  %v228_v19 = vld [vmem:[#allocation2 + $0x58] sm:$0xff]  ;;  %v225_v21 = vld [vmem:[#allocation2 + $0x40] sm:$0xff] }
  0x61   : > { %v298_v20 = vmax.f32 %v226_v15, 0.0  ;;  %v227_v22 = vld [vmem:[#allocation2 + $0x50] sm:$0xff]  ;;  %v1013_v23 = vpack.c.bf16 %v291_v10, %v289_v7  ;;  %v300_v25 = vmax.f32 %v228_v19, 0.0  ;;  %v230_v26 = vld [vmem:[#allocation2 + $0x68] sm:$0xff]  ;;  %v232_v27 = vld [vmem:[#allocation2 + $0x78] sm:$0xff]  ;;  %v297_v29 = vmax.f32 %v225_v21, 0.0 }
  0x62   : > { %v1015_v24 = vpack.c.bf16 %v296_v12, %v294_v11  ;;  %1012 = vmatprep.subr.bf16.mxu1 %v1011_v16  ;;  %v1017_v28 = vpack.c.bf16 %v295_v18, %v293_v17  ;;  %v299_v30 = vmax.f32 %v227_v22, 0.0  ;;  %v302_v32 = vmax.f32 %v230_v26, 0.0  ;;  %v229_v34 = vld [vmem:[#allocation2 + $0x60] sm:$0xff]  ;;  %v231_v35 = vld [vmem:[#allocation2 + $0x70] sm:$0xff]  ;;  %v234_v36 = vld [vmem:[#allocation2 + $0x88] sm:$0xff]  ;;  %s1638_s19 = scalar_lea.vmem [#allocation7], %s1122_s17 }
  0x63   : > { %1014 = vmatpush1.bf16.msra.mxu1 %v1013_v23  ;;  %v1019_v31 = vpack.c.bf16 %v300_v25, %v298_v20  ;;  %v304_v33 = vmax.f32 %v232_v27, 0.0  ;;  %v236_v37 = vld [vmem:[#allocation2 + $0x98] sm:$0xff]  ;;  %v301_v39 = vmax.f32 %v229_v34, 0.0  ;;  %v303_v40 = vmax.f32 %v231_v35, 0.0  ;;  %v233_v44 = vld [vmem:[#allocation2 + $0x80] sm:$0xff]  ;;  %v235_v45 = vld [vmem:[#allocation2 + $0x90] sm:$0xff] }
  0x64   : > { %1016 = vmatprep.subr.bf16.mxu1 %v1015_v24  ;;  %v1021_v38 = vpack.c.bf16 %v299_v30, %v297_v29  ;;  %v306_v42 = vmax.f32 %v234_v36, 0.0  ;;  %v308_v43 = vmax.f32 %v236_v37, 0.0  ;;  %v238_v46 = vld [vmem:[#allocation2 + $0xa8] sm:$0xff]  ;;  %v240_v47 = vld [vmem:[#allocation2 + $0xb8] sm:$0xff]  ;;  %v305_v49 = vmax.f32 %v233_v44, 0.0  ;;  %v237_v54 = vld [vmem:[#allocation2 + $0xa0] sm:$0xff] }
  0x65   : > { %v1023_v41 = vpack.c.bf16 %v304_v33, %v302_v32  ;;  %v1025_v48 = vpack.c.bf16 %v303_v40, %v301_v39  ;;  %v307_v50 = vmax.f32 %v235_v45, 0.0  ;;  %v310_v52 = vmax.f32 %v238_v46, 0.0  ;;  %v239_v55 = vld [vmem:[#allocation2 + $0xb0] sm:$0xff]  ;;  %v242_v56 = vld [vmem:[#allocation2 + $0xc8] sm:$0xff]  ;;  %v244_v57 = vld [vmem:[#allocation2 + $0xd8] sm:$0xff]  ;;  %s1010_s21 = smul.u32 4608, %s1340_s12 }
  0x66   : > { %v1027_v51 = vpack.c.bf16 %v308_v43, %v306_v42  ;;  %v312_v53 = vmax.f32 %v240_v47, 0.0  ;;  %v309_v59 = vmax.f32 %v237_v54, 0.0  ;;  %v311_v60 = vmax.f32 %v239_v55, 0.0  ;;  %v241_v61 = vld [vmem:[#allocation2 + $0xc0] sm:$0xff]  ;;  %v282_v62 = vld [vmem:[#allocation2 + $0x208] sm:$0xff]  ;;  %v243_v3 = vld [vmem:[#allocation2 + $0xd0] sm:$0xff] }
  0x67   : > { %1018 = vmatpush1.bf16.msra.mxu1 %v1017_v28  ;;  %v1029_v58 = vpack.c.bf16 %v307_v50, %v305_v49  ;;  %v314_v1 = vmax.f32 %v242_v56, 0.0  ;;  %v316_v2 = vmax.f32 %v244_v57, 0.0  ;;  %v246_v4 = vld [vmem:[#allocation2 + $0xe8] sm:$0xff]  ;;  %v284_v5 = vld [vmem:[#allocation2 + $0x218] sm:$0xff]  ;;  %v281_v7 = vld [vmem:[#allocation2 + $0x200] sm:$0xff]  ;;  %v313_v9 = vmax.f32 %v241_v61, 0.0  ;;  %s1720_s6 = scalar_lea.hbm %s1776_s2, %s1010_s21 }
  0x68   : > { %1020 = vmatprep.subr.bf16.mxu1 %v1019_v31  ;;  %v1031_v63 = vpack.c.bf16 %v312_v53, %v310_v52  ;;  %v248_v6 = vld [vmem:[#allocation2 + $0xf8] sm:$0xff]  ;;  %v283_v8 = vld [vmem:[#allocation2 + $0x210] sm:$0xff]  ;;  %v354_v10 = vmax.f32 %v282_v62, 0.0  ;;  %v286_v11 = vld [vmem:[#allocation2 + $0x228] sm:$0xff]  ;;  %v1033_v12 = vpack.c.bf16 %v311_v60, %v309_v59  ;;  %v315_v13 = vmax.f32 %v243_v3, 0.0  ;;  %s872_s30 = sshll.u32 %s1638_s19, 4  ;;  %s1722_s30 = int_to_ptr.vmem [resolvable:$true] %s872_s30 }
  0x69   : > { %v318_v14 = vmax.f32 %v246_v4, 0.0  ;;  %v245_v15 = vld [vmem:[#allocation2 + $0xe0] sm:$0xff]  ;;  %v356_v16 = vmax.f32 %v284_v5, 0.0  ;;  %v288_v17 = vld [vmem:[#allocation2 + $0x238] sm:$0xff]  ;;  %v1035_v18 = vpack.c.bf16 %v316_v2, %v314_v1  ;;  %v320_v19 = vmax.f32 %v248_v6, 0.0  ;;  %v247_v20 = vld [vmem:[#allocation2 + $0xf0] sm:$0xff] }
  0x6a   : > { %v353_v21 = vmax.f32 %v281_v7, 0.0  ;;  %v355_v22 = vmax.f32 %v283_v8, 0.0  ;;  %v285_v23 = vld [vmem:[#allocation2 + $0x220] sm:$0xff]  ;;  %v287_v24 = vld [vmem:[#allocation2 + $0x230] sm:$0xff]  ;;  %v250_v25 = vld [vmem:[#allocation2 + $0x108] sm:$0xff]  ;;  %v358_v28 = vmax.f32 %v286_v11, 0.0  ;;  %v1037_v33 = vpack.c.bf16 %v315_v13, %v313_v9 }
  0x6b   : > { %1022 = vmatpush1.bf16.msra.mxu1 %v1021_v38  ;;  %v252_v26 = vld [vmem:[#allocation2 + $0x118] sm:$0xff]  ;;  %v1075_v27 = vpack.c.bf16 %v356_v16, %v354_v10  ;;  %v317_v30 = vmax.f32 %v245_v15, 0.0  ;;  %v360_v32 = vmax.f32 %v288_v17, 0.0  ;;  %v319_v34 = vmax.f32 %v247_v20, 0.0  ;;  %v249_v40 = vld [vmem:[#allocation2 + $0x100] sm:$0xff]  ;;  %v254_v43 = vld [vmem:[#allocation2 + $0x128] sm:$0xff] }
  0x6c   : > { %1024 = vmatprep.subr.bf16.mxu1 %v1023_v41  ;;  %v362_v29 = vld [vmem:[%s1529_s26 + $0x8] sm:$0xff]  ;;  %v1077_v31 = vpack.c.bf16 %v355_v22, %v353_v21  ;;  %v357_v35 = vmax.f32 %v285_v23, 0.0  ;;  %v359_v36 = vmax.f32 %v287_v24, 0.0  ;;  %v1039_v37 = vpack.c.bf16 %v320_v19, %v318_v14  ;;  %v251_v41 = vld [vmem:[#allocation2 + $0x110] sm:$0xff]  ;;  %v253_v52 = vld [vmem:[#allocation2 + $0x120] sm:$0xff]  ;;  %s854_s12 = scalar_lea.sflag [#allocation4], %s1525_s8 }
  0x6d   : > { %534 = vmatprep.mubr.f32.mxu1 %v362_v29  ;;  %1076 = vmatprep.subr.bf16.mxu0 %v1075_v27  ;;  %v322_v38 = vmax.f32 %v250_v25, 0.0  ;;  %v324_v39 = vmax.f32 %v252_v26, 0.0  ;;  %v1079_v42 = vpack.c.bf16 %v360_v32, %v358_v28  ;;  %v256_v44 = vld [vmem:[#allocation2 + $0x138] sm:$0xff]  ;;  %v1041_v46 = vpack.c.bf16 %v319_v34, %v317_v30  ;;  %v255_v53 = vld [vmem:[#allocation2 + $0x130] sm:$0xff]  ;;  %v258_v55 = vld [vmem:[#allocation2 + $0x148] sm:$0xff]  ;;  %s1262_s27 = scalar_lea.vmem %s1722_s30, 4608 }
  0x6e   : > { %1078 = vmatpush1.bf16.msra.mxu0 %v1077_v31  ;;  %v1081_v45 = vpack.c.bf16 %v359_v36, %v357_v35  ;;  %v321_v47 = vmax.f32 %v249_v40, 0.0  ;;  %v326_v50 = vmax.f32 %v254_v43, 0.0  ;;  %v363_v54 = vld [vmem:[%s1529_s26 + $0x10] sm:$0xff]  ;;  %v260_v56 = vld [vmem:[#allocation2 + $0x158] sm:$0xff]  ;;  %v327_v59 = vmax.f32 %v255_v53, 0.0  ;;  %v262_v3 = vld [vmem:[#allocation2 + $0x168] sm:$0xff]  ;;  %p1263_p4 = scmp.ne.s32.totalorder %s1722_s30, %s1262_s27 }
  0x6f   : > { %1026 = vmatpush1.bf16.msra.mxu1 %v1025_v48  ;;  %1080 = vmatprep.subr.bf16.mxu0 %v1079_v42  ;;  %v323_v48 = vmax.f32 %v251_v41, 0.0  ;;  %v1043_v49 = vpack.c.bf16 %v324_v39, %v322_v38  ;;  %v330_v61 = vmax.f32 %v258_v55, 0.0  ;;  %v332_v62 = vmax.f32 %v260_v56, 0.0  ;;  %v259_v1 = vld [vmem:[#allocation2 + $0x150] sm:$0xff]  ;;  %v366_v2 = vld [vmem:[%s1529_s26 + $0x28] sm:$0xff]  ;;  %v261_v11 = vld [vmem:[#allocation2 + $0x160] sm:$0xff] }
  0x70   : > { %1028 = vmatprep.subr.bf16.mxu1 %v1027_v51  ;;  %v328_v51 = vmax.f32 %v256_v44, 0.0  ;;  %v264_v4 = vld [vmem:[#allocation2 + $0x178] sm:$0xff]  ;;  %v331_v7 = vmax.f32 %v259_v1, 0.0  ;;  %v334_v9 = vmax.f32 %v262_v3, 0.0  ;;  %v369_v13 = vld [vmem:[%s1529_s26 + $0x40] sm:$0xff]  ;;  %v266_v14 = vld [vmem:[#allocation2 + $0x188] sm:$0xff]  ;;  %p1264_p6 = pnand %p1263_p4, %p1467_p10 }
  0x71   : > { %v1045_v57 = vpack.c.bf16 %v323_v48, %v321_v47  ;;  %v1051_v8 = vpack.c.bf16 %v332_v62, %v330_v61  ;;  %v336_v10 = vmax.f32 %v264_v4, 0.0  ;;  %v268_v15 = vld [vmem:[#allocation2 + $0x198] sm:$0xff]  ;;  %v333_v17 = vmax.f32 %v261_v11, 0.0  ;;  %v265_v22 = vld [vmem:[#allocation2 + $0x180] sm:$0xff]  ;;  %v267_v23 = vld [vmem:[#allocation2 + $0x190] sm:$0xff]  ;;  %s1357_s24 = smov [#allocation7]  }
  0x72   : > { %1082 = vmatpush1.bf16.msra.mxu0 %v1081_v45  ;;  %v1047_v60 = vpack.c.bf16 %v328_v51, %v326_v50  ;;  %v338_v20 = vmax.f32 %v266_v14, 0.0  ;;  %v340_v21 = vmax.f32 %v268_v15, 0.0  ;;  %v372_v24 = vld [vmem:[%s1529_s26 + $0x58] sm:$0xff]  ;;  %v337_v28 = vmax.f32 %v265_v22, 0.0  ;;  %v271_v34 = vld [vmem:[#allocation2 + $0x1b0] sm:$0xff]  ;;  %v273_v44 = vld [vmem:[#allocation2 + $0x1c0] sm:$0xff]  ;;  %p1265_p8 = pneg %p1264_p6 }
  0x73   : > { %1030 = vmatpush1.bf16.msra.mxu1 %v1029_v58  ;;  %v325_v58 = vmax.f32 %v253_v52, 0.0  ;;  %v1055_v19 = vpack.c.bf16 %v336_v10, %v334_v9  ;;  %v270_v25 = vld [vmem:[#allocation2 + $0x1a8] sm:$0xff]  ;;  %v272_v26 = vld [vmem:[#allocation2 + $0x1b8] sm:$0xff]  ;;  %v339_v29 = vmax.f32 %v267_v23, 0.0  ;;  %v375_v35 = vld [vmem:[%s1529_s26 + $0x70] sm:$0xff]  ;;  %v343_v40 = vmax.f32 %v271_v34, 0.0 }
  0x74   : > { %1032 = vmatprep.subr.bf16.mxu1 %v1031_v63  ;;  %v257_v63 = vld [vmem:[#allocation2 + $0x140] sm:$0xff]  ;;  %v1059_v30 = vpack.c.bf16 %v340_v21, %v338_v20  ;;  %v342_v31 = vmax.f32 %v270_v25, 0.0  ;;  %v344_v32 = vmax.f32 %v272_v26, 0.0  ;;  %v274_v36 = vld [vmem:[#allocation2 + $0x1c8] sm:$0xff]  ;;  %v275_v45 = vld [vmem:[#allocation2 + $0x1d0] sm:$0xff]  ;;  %v345_v50 = vmax.f32 %v273_v44, 0.0 }
  0x75   : > { %986 = vmatmul.mubr.msk.f32.vlgmr.msra.gmra.mrb[0].mxu0 %vm415_vm0, %v363_v54  ;;  %v1049_v5 = vpack.c.bf16 %v327_v59, %v325_v58  ;;  %v329_v6 = vmax.f32 %v257_v63, 0.0  ;;  %v1061_v38 = vpack.c.bf16 %v339_v29, %v337_v28  ;;  %v346_v42 = vmax.f32 %v274_v36, 0.0  ;;  %v278_v47 = vld [vmem:[#allocation2 + $0x1e8] sm:$0xff]  ;;  %v280_v48 = vld [vmem:[#allocation2 + $0x1f8] sm:$0xff]  ;;  %v277_v55 = vld [vmem:[#allocation2 + $0x1e0] sm:$0xff]  ;;  %s1266_s23 = sshll.u32 %s1357_s24, 4  ;;  %s1267_s23 = int_to_ptr.vmem [resolvable:$false] %s1266_s23 }
  0x76   : > { %713 = vmatprep.mubr.f32.mxu0 %v1356_v0  ;;  %v1063_v41 = vpack.c.bf16 %v344_v32, %v342_v31  ;;  %v347_v51 = vmax.f32 %v275_v45, 0.0  ;;  %v350_v53 = vmax.f32 %v278_v47, 0.0  ;;  %v352_v54 = vmax.f32 %v280_v48, 0.0  ;;  %v279_v56 = vld [vmem:[#allocation2 + $0x1f0] sm:$0xff]  ;;  %v384_v62 = vld [vmem:[%s1529_s26 + $0xb8] sm:$0xff]  ;;  %v390_v4 = vld [vmem:[%s1529_s26 + $0xe8] sm:$0xff]  ;;  %p1269_p12 = scmp.lt.s32.totalorder %s1722_s30, %s1267_s23 }
  0x77   : > { %1034 = vmatpush1.bf16.msra.mxu1 %v1033_v12  ;;  %v263_v12 = vld [vmem:[#allocation2 + $0x170] sm:$0xff]  ;;  %v1053_v16 = vpack.c.bf16 %v331_v7, %v329_v6  ;;  %v349_v59 = vmax.f32 %v277_v55, 0.0  ;;  %v368_v6 = vld [vmem:[%s1529_s26 + $0x38] sm:$0xff]  ;;  %v370_v11 = vld [vmem:[%s1529_s26 + $0x48] sm:$0xff]  ;;  %s1268_s29 = scalar_lea.vmem %s1267_s23, 9216 }
  0x78   : > { %1036 = vmatprep.subr.bf16.mxu1 %v1035_v18  ;;  %v335_v18 = vmax.f32 %v263_v12, 0.0  ;;  %v1069_v58 = vpack.c.bf16 %v347_v51, %v345_v50  ;;  %v1071_v61 = vpack.c.bf16 %v352_v54, %v350_v53  ;;  %v387_v1 = vld [vmem:[%s1529_s26 + $0xd0] sm:$0xff]  ;;  %v365_v3 = vld [vmem:[%s1529_s26 + $0x20] sm:$0xff]  ;;  %v396_v10 = vld [vmem:[%s1529_s26 + $0x118] sm:$0xff]  ;;  %p1270_p13 = scmp.lt.s32.totalorder %s1268_s29, %s1262_s27 }
  0x79   : > { %987 = vmatmul.mubr.msk.f32.gmra.mrb[2].mxu0 %vm415_vm0, %v366_v2  ;;  %v361_v2 = vld [vmem:[%s1529_s26] sm:$0xff]  ;;  %v371_v9 = vld [vmem:[%s1529_s26 + $0x50] sm:$0xff]  ;;  %v374_v12 = vld [vmem:[%s1529_s26 + $0x68] sm:$0xff] }
  0x7a   : > { %719 = vmatprep.mubr.f32.mxu0 %v1356_v0  ;;  %v1057_v27 = vpack.c.bf16 %v335_v18, %v333_v17  ;;  %v393_v7 = vld [vmem:[%s1529_s26 + $0x100] sm:$0xff]  ;;  %v376_v17 = vld [vmem:[%s1529_s26 + $0x78] sm:$0xff]  ;;  %v379_v20 = vld [vmem:[%s1529_s26 + $0x90] sm:$0xff]  ;;  %p1271_p0 = por %p1270_p13, %p1269_p12 }
  0x7b   : > { %1038 = vmatpush1.bf16.msra.mxu1 %v1037_v33  ;;  %v269_v33 = vld [vmem:[#allocation2 + $0x1a0] sm:$0xff]  ;;  %v380_v18 = vld [vmem:[%s1529_s26 + $0x98] sm:$0xff]  ;;  %v382_v23 = vld [vmem:[%s1529_s26 + $0xa8] sm:$0xff] }
  0x7c   : > { %1040 = vmatprep.subr.bf16.mxu1 %v1039_v37  ;;  %v276_v37 = vld [vmem:[#allocation2 + $0x1d8] sm:$0xff]  ;;  %v341_v39 = vmax.f32 %v269_v33, 0.0  ;;  %v373_v14 = vld [vmem:[%s1529_s26 + $0x60] sm:$0xff]  ;;  %v383_v21 = vld [vmem:[%s1529_s26 + $0xb0] sm:$0xff]  ;;  %p1272_p5 = pnand %p1271_p0, %p1265_p8 }
  0x7d   : > { %988 = vmatmul.mubr.msk.f32.gmra.mrb[4].mxu0 %vm415_vm0, %v369_v13  ;;  %v348_v43 = vmax.f32 %v276_v37, 0.0  ;;  %v399_v13 = vld [vmem:[%s1529_s26 + $0x130] sm:$0xff]  ;;  %v377_v15 = vld [vmem:[%s1529_s26 + $0x80] sm:$0xff]  ;;  %v408_v22 = vld [vmem:[%s1529_s26 + $0x178] sm:$0xff] }
  0x7e   : > { %725 = vmatprep.mubr.f32.mxu0 %v1356_v0  ;;  %v411_v25 = vld [vmem:[%s1529_s26 + $0x190] sm:$0xff]  ;;  %v385_v26 = vld [vmem:[%s1529_s26 + $0xc0] sm:$0xff]  ;;  %v414_v28 = vld [vmem:[%s1529_s26 + $0x1a8] sm:$0xff] }
  0x7f   : > { %1042 = vmatpush1.bf16.msra.mxu1 %v1041_v46  ;;  %v378_v46 = vld [vmem:[%s1529_s26 + $0x88] sm:$0xff]  ;;  %v1067_v52 = vpack.c.bf16 %v348_v43, %v346_v42  ;;  %v388_v29 = vld [vmem:[%s1529_s26 + $0xd8] sm:$0xff]  ;;  %v391_v31 = vld [vmem:[%s1529_s26 + $0xf0] sm:$0xff] }
  0x80   : > { %1044 = vmatprep.subr.bf16.mxu1 %v1043_v49  ;;  %v1065_v49 = vpack.c.bf16 %v343_v40, %v341_v39  ;;  %v395_v32 = vld [vmem:[%s1529_s26 + $0x110] sm:$0xff]  ;;  %v398_v33 = vld [vmem:[%s1529_s26 + $0x128] sm:$0xff]  ;;  %v397_v34 = vld [vmem:[%s1529_s26 + $0x120] sm:$0xff] }
  0x81   : > { %989 = vmatmul.mubr.msk.f32.gmra.mrb[6].mxu0 %vm415_vm0, %v372_v24  ;;  %v386_v24 = vld [vmem:[%s1529_s26 + $0xc8] sm:$0xff]  ;;  %v400_v36 = vld [vmem:[%s1529_s26 + $0x138] sm:$0xff]  ;;  %v407_v39 = vld [vmem:[%s1529_s26 + $0x170] sm:$0xff] }
  0x82   : > { %731 = vmatprep.mubr.f32.mxu0 %v1356_v0  ;;  %v404_v37 = vld [vmem:[%s1529_s26 + $0x158] sm:$0xff]  ;;  %v406_v40 = vld [vmem:[%s1529_s26 + $0x168] sm:$0xff]  ;;  %v409_v42 = vld [vmem:[%s1529_s26 + $0x180] sm:$0xff] }
  0x83   : > { %1046 = vmatpush1.bf16.msra.mxu1 %v1045_v57  ;;  %v381_v57 = vld [vmem:[%s1529_s26 + $0xa0] sm:$0xff]  ;;  %v412_v44 = vld [vmem:[%s1529_s26 + $0x198] sm:$0xff] }
  0x84   : > { %1048 = vmatprep.subr.bf16.mxu1 %v1047_v60  ;;  %v351_v60 = vmax.f32 %v279_v56, 0.0  ;;  %v413_v43 = vld [vmem:[%s1529_s26 + $0x1a0] sm:$0xff] }
  0x85   : > { %990 = vmatmul.mubr.msk.f32.gmra.mrb[8].mxu0 %vm415_vm0, %v375_v35  ;;  %v401_v35 = vld [vmem:[%s1529_s26 + $0x140] sm:$0xff] }
  0x86   : > { %737 = vmatprep.mubr.f32.mxu0 %v1356_v0  ;;  %v1073_v63 = vpack.c.bf16 %v351_v60, %v349_v59 }
  0x87   : > { %1050 = vmatpush1.bf16.msra.mxu1 %v1049_v5  ;;  %v364_v5 = vld [vmem:[%s1529_s26 + $0x18] sm:$0xff] }
  0x88   : > { %1052 = vmatprep.subr.bf16.mxu1 %v1051_v8  ;;  %v367_v8 = vld [vmem:[%s1529_s26 + $0x30] sm:$0xff] }
  0x89   : > { %991 = vmatmul.mubr.msk.f32.gmra.mrb[10].mxu0 %vm415_vm0, %v378_v46 }
  0x8a   : > { %743 = vmatprep.mubr.f32.mxu0 %v1356_v0 }
  0x8b   : > { %1054 = vmatpush1.bf16.msra.mxu1 %v1053_v16  ;;  %v402_v16 = vld [vmem:[%s1529_s26 + $0x148] sm:$0xff] }
  0x8c   : > { %1056 = vmatprep.subr.bf16.mxu1 %v1055_v19  ;;  %v405_v19 = vld [vmem:[%s1529_s26 + $0x160] sm:$0xff] }
  0x8d   : > { %992 = vmatmul.mubr.msk.f32.gmra.mrb[12].mxu0 %vm415_vm0, %v381_v57 }
  0x8e   : > { %749 = vmatprep.mubr.f32.mxu0 %v1356_v0 }
  0x8f   : > { %1058 = vmatpush1.bf16.msra.mxu1 %v1057_v27  ;;  %v389_v27 = vld [vmem:[%s1529_s26 + $0xe0] sm:$0xff] }
  0x90   : > { %1060 = vmatprep.subr.bf16.mxu1 %v1059_v30  ;;  %v392_v30 = vld [vmem:[%s1529_s26 + $0xf8] sm:$0xff] }
  0x91   : > { %993 = vmatmul.mubr.msk.f32.gmra.mrb[14].mxu0 %vm415_vm0, %v384_v62 }
  0x92   : > { %755 = vmatprep.mubr.f32.mxu0 %v1356_v0 }
  0x93   : > { %1062 = vmatpush1.bf16.msra.mxu1 %v1061_v38  ;;  %v403_v38 = vld [vmem:[%s1529_s26 + $0x150] sm:$0xff] }
  0x94   : > { %1064 = vmatprep.subr.bf16.mxu1 %v1063_v41  ;;  %v410_v41 = vld [vmem:[%s1529_s26 + $0x188] sm:$0xff] }
  0x95   : > { %994 = vmatmul.mubr.msk.f32.gmra.mrb[16].mxu0 %vm415_vm0, %v387_v1 }
  0x96   : > { %761 = vmatprep.mubr.f32.mxu0 %v1356_v0 }
  0x97   : > { %1066 = vmatpush1.bf16.msra.mxu1 %v1065_v49 }
  0x98   : > { %1068 = vmatprep.subr.bf16.mxu1 %v1067_v52 }
  0x99   : > { %995 = vmatmul.mubr.msk.f32.gmra.mrb[18].mxu0 %vm415_vm0, %v390_v4 }
  0x9a   : > { %767 = vmatprep.mubr.f32.mxu0 %v1356_v0 }
  0x9b   : > { %1070 = vmatpush1.bf16.msra.mxu1 %v1069_v58 }
  0x9c   : > { %1072 = vmatprep.subr.bf16.mxu1 %v1071_v61 }
  0x9d   : > { %996 = vmatmul.mubr.msk.f32.gmra.mrb[20].mxu0 %vm415_vm0, %v393_v7 }
  0x9e   : > { %773 = vmatprep.mubr.f32.mxu0 %v1356_v0 }
  0x9f   : > { %1074 = vmatpush1.bf16.msra.mxu1 %v1073_v63 }
  0xa1   : > { %997 = vmatmul.mubr.msk.f32.gmra.mrb[22].mxu0 %vm415_vm0, %v396_v10 }
  0xa2   : > { %535 = vmatmul.mubr.f32.vlgmr.msra.gmra.mrb[0].mxu1 %v361_v2  ;;  %779 = vmatprep.mubr.f32.mxu0 %v1356_v0 }
  0xa3   : > { %540 = vmatprep.mubr.f32.mxu1 %v365_v3 }
  0xa5   : > { %998 = vmatmul.mubr.msk.f32.gmra.mrb[24].mxu0 %vm415_vm0, %v399_v13 }
  0xa6   : > { %541 = vmatmul.mubr.f32.gmra.mrb[2].mxu1 %v364_v5  ;;  %785 = vmatprep.mubr.f32.mxu0 %v1356_v0 }
  0xa7   : > { %546 = vmatprep.mubr.f32.mxu1 %v368_v6 }
  0xa9   : > { %999 = vmatmul.mubr.msk.f32.gmra.mrb[26].mxu0 %vm415_vm0, %v402_v16 }
  0xaa   : > { %547 = vmatmul.mubr.f32.gmra.mrb[4].mxu1 %v367_v8  ;;  %791 = vmatprep.mubr.f32.mxu0 %v1356_v0 }
  0xab   : > { %552 = vmatprep.mubr.f32.mxu1 %v371_v9 }
  0xad   : > { %1000 = vmatmul.mubr.msk.f32.gmra.mrb[28].mxu0 %vm415_vm0, %v405_v19 }
  0xae   : > { %553 = vmatmul.mubr.f32.gmra.mrb[6].mxu1 %v370_v11  ;;  %797 = vmatprep.mubr.f32.mxu0 %v1356_v0 }
  0xaf   : > { %558 = vmatprep.mubr.f32.mxu1 %v374_v12 }
  0xb1   : > { %1001 = vmatmul.mubr.msk.f32.gmra.mrb[30].mxu0 %vm415_vm0, %v408_v22 }
  0xb2   : > { %559 = vmatmul.mubr.f32.gmra.mrb[8].mxu1 %v373_v14  ;;  %803 = vmatprep.mubr.f32.mxu0 %v1356_v0 }
  0xb3   : > { %564 = vmatprep.mubr.f32.mxu1 %v377_v15 }
  0xb5   : > { %1002 = vmatmul.mubr.msk.f32.gmra.mrb[32].mxu0 %vm415_vm0, %v411_v25 }
  0xb6   : > { %565 = vmatmul.mubr.f32.gmra.mrb[10].mxu1 %v376_v17  ;;  %809 = vmatprep.mubr.f32.mxu0 %v1356_v0  ;;  %v394_v0 = vld [vmem:[%s1529_s26 + $0x108] sm:$0xff] }
  0xb7   : > { %570 = vmatprep.mubr.f32.mxu1 %v380_v18 }
  0xb9   : > { %1003 = vmatmul.mubr.msk.f32.gmra.mrb[34].mxu0 %vm415_vm0, %v414_v28 }
  0xba   : > { %571 = vmatmul.mubr.f32.gmra.mrb[12].mxu1 %v379_v20 }
  0xbb   : > { %576 = vmatprep.mubr.f32.mxu1 %v383_v21 }
  0xbe   : > { %577 = vmatmul.mubr.f32.gmra.mrb[14].mxu1 %v382_v23 }
  0xbf   : > { %582 = vmatprep.mubr.f32.mxu1 %v386_v24 }
  0xc2   : > { %583 = vmatmul.mubr.f32.gmra.mrb[16].mxu1 %v385_v26 }
  0xc3   : > { %588 = vmatprep.mubr.f32.mxu1 %v389_v27 }
  0xc6   : > { %589 = vmatmul.mubr.f32.gmra.mrb[18].mxu1 %v388_v29 }
  0xc7   : > { %594 = vmatprep.mubr.f32.mxu1 %v392_v30 }
  0xca   : > { %595 = vmatmul.mubr.f32.gmra.mrb[20].mxu1 %v391_v31 }
  0xcb   : > { %600 = vmatprep.mubr.f32.mxu1 %v395_v32 }
  0xce   : > { %601 = vmatmul.mubr.f32.gmra.mrb[22].mxu1 %v394_v0 }
  0xcf   : > { %606 = vmatprep.mubr.f32.mxu1 %v398_v33 }
  0xd2   : > { %607 = vmatmul.mubr.f32.gmra.mrb[24].mxu1 %v397_v34 }
  0xd3   : > { %612 = vmatprep.mubr.f32.mxu1 %v401_v35 }
  0xd6   : > { %613 = vmatmul.mubr.f32.gmra.mrb[26].mxu1 %v400_v36 }
  0xd7   : > { %618 = vmatprep.mubr.f32.mxu1 %v404_v37 }
  0xda   : > { %619 = vmatmul.mubr.f32.gmra.mrb[28].mxu1 %v403_v38 }
  0xdb   : > { %624 = vmatprep.mubr.f32.mxu1 %v407_v39 }
  0xde   : > { %625 = vmatmul.mubr.f32.gmra.mrb[30].mxu1 %v406_v40 }
  0xdf   : > { %630 = vmatprep.mubr.f32.mxu1 %v410_v41 }
  0xe2   : > { %631 = vmatmul.mubr.f32.gmra.mrb[32].mxu1 %v409_v42 }
  0xe3   : > { %636 = vmatprep.mubr.f32.mxu1 %v413_v43 }
  0xe6   : > { %637 = vmatmul.mubr.f32.gmra.mrb[34].mxu1 %v412_v44 }
 0x148   : > { %v709_v45 = vpop.f32.mrb[0].mxu0 }
 0x149   : > { %v711_v46 = vpop.f32.mrb[1].mxu0 }
 0x14c   : > { %v715_v47 = vpop.f32.mrb[2].mxu0 }
 0x14d   : > { %v717_v48 = vpop.f32.mrb[3].mxu0 }
 0x150   : > { %v721_v49 = vpop.f32.mrb[4].mxu0 }
 0x151   : > { %v723_v50 = vpop.f32.mrb[5].mxu0 }
 0x154   : > { %v727_v51 = vpop.f32.mrb[6].mxu0 }
 0x155   : > { %v729_v52 = vpop.f32.mrb[7].mxu0 }
 0x158   : > { %v733_v53 = vpop.f32.mrb[8].mxu0 }
 0x159   : > { %v735_v54 = vpop.f32.mrb[9].mxu0 }
 0x15c   : > { %v739_v55 = vpop.f32.mrb[10].mxu0 }
 0x15d   : > { %v741_v56 = vpop.f32.mrb[11].mxu0 }
 0x160   : > { %v745_v57 = vpop.f32.mrb[12].mxu0 }
 0x161   : > { %v747_v58 = vpop.f32.mrb[13].mxu0 }
 0x164   : > { %v1625_v59 = vpop.f32.mrb[14].mxu0 }
 0x165   : > { %v1627_v60 = vpop.f32.mrb[15].mxu0 }
 0x168   : > { %v1630_v61 = vpop.f32.mrb[16].mxu0 }
 0x169   : > { %v1632_v62 = vpop.f32.mrb[17].mxu0 }
 0x16c   : > { %v1634_v3 = vpop.f32.mrb[18].mxu0 }
 0x16d   : > { %v1636_v5 = vpop.f32.mrb[19].mxu0 }
 0x170   : > { %v1643_v9 = vpop.f32.mrb[20].mxu0 }
 0x171   : > { %v1645_v11 = vpop.f32.mrb[21].mxu0 }
 0x174   : > { %v1650_v15 = vpop.f32.mrb[22].mxu0 }
 0x175   : > { %v536_v63 = vpop.f32.mrb[0].mxu1  ;;  %v1652_v17 = vpop.f32.mrb[23].mxu0 }
 0x176   : > { %v710_v1 = vadd.f32 %v709_v45, %v536_v63  ;;  %v538_v2 = vpop.f32.mrb[1].mxu1 }
 0x177   : > { %v712_v4 = vadd.f32 %v711_v46, %v538_v2 }
 0x178   : > { %816 = vst [vmem:[%s1638_s19] sm:$0xff] %v710_v1  ;;  %v1657_v21 = vpop.f32.mrb[24].mxu0 }
 0x179   : > { %818 = vst.msk [vmem:[%s1638_s19 + $0x8] sm:$0xff] %vm817_vm1, %v712_v4  ;;  %v542_v6 = vpop.f32.mrb[2].mxu1  ;;  %v1659_v23 = vpop.f32.mrb[25].mxu0 }
 0x17a   : > { %v716_v7 = vadd.f32 %v715_v47, %v542_v6  ;;  %v544_v8 = vpop.f32.mrb[3].mxu1 }
 0x17b   : > { %v718_v10 = vadd.f32 %v717_v48, %v544_v8 }
 0x17c   : > { %819 = vst [vmem:[%s1638_s19 + $0x10] sm:$0xff] %v716_v7  ;;  %v787_v27 = vpop.f32.mrb[26].mxu0 }
 0x17d   : > { %820 = vst.msk [vmem:[%s1638_s19 + $0x18] sm:$0xff] %vm817_vm1, %v718_v10  ;;  %v548_v12 = vpop.f32.mrb[4].mxu1  ;;  %v789_v29 = vpop.f32.mrb[27].mxu0 }
 0x17e   : > { %v722_v13 = vadd.f32 %v721_v49, %v548_v12  ;;  %v550_v14 = vpop.f32.mrb[5].mxu1 }
 0x17f   : > { %v724_v16 = vadd.f32 %v723_v50, %v550_v14 }
 0x180   : > { %821 = vst [vmem:[%s1638_s19 + $0x20] sm:$0xff] %v722_v13  ;;  %v793_v0 = vpop.f32.mrb[28].mxu0 }
 0x181   : > { %822 = vst.msk [vmem:[%s1638_s19 + $0x28] sm:$0xff] %vm817_vm1, %v724_v16  ;;  %v554_v18 = vpop.f32.mrb[6].mxu1  ;;  %v795_v34 = vpop.f32.mrb[29].mxu0 }
 0x182   : > { %v728_v19 = vadd.f32 %v727_v51, %v554_v18  ;;  %v556_v20 = vpop.f32.mrb[7].mxu1 }
 0x183   : > { %v730_v22 = vadd.f32 %v729_v52, %v556_v20 }
 0x184   : > { %823 = vst [vmem:[%s1638_s19 + $0x30] sm:$0xff] %v728_v19  ;;  %v799_v38 = vpop.f32.mrb[30].mxu0 }
 0x185   : > { %824 = vst.msk [vmem:[%s1638_s19 + $0x38] sm:$0xff] %vm817_vm1, %v730_v22  ;;  %v560_v24 = vpop.f32.mrb[8].mxu1  ;;  %v801_v40 = vpop.f32.mrb[31].mxu0 }
 0x186   : > { %v734_v25 = vadd.f32 %v733_v53, %v560_v24  ;;  %v562_v26 = vpop.f32.mrb[9].mxu1 }
 0x187   : > { %v736_v28 = vadd.f32 %v735_v54, %v562_v26 }
 0x188   : > { %825 = vst [vmem:[%s1638_s19 + $0x40] sm:$0xff] %v734_v25  ;;  %v805_v44 = vpop.f32.mrb[32].mxu0 }
 0x189   : > { %826 = vst.msk [vmem:[%s1638_s19 + $0x48] sm:$0xff] %vm817_vm1, %v736_v28  ;;  %v566_v30 = vpop.f32.mrb[10].mxu1  ;;  %v807_v46 = vpop.f32.mrb[33].mxu0 }
 0x18a   : > { %v740_v31 = vadd.f32 %v739_v55, %v566_v30  ;;  %v568_v32 = vpop.f32.mrb[11].mxu1 }
 0x18b   : > { %v742_v33 = vadd.f32 %v741_v56, %v568_v32 }
 0x18c   : > { %827 = vst [vmem:[%s1638_s19 + $0x50] sm:$0xff] %v740_v31  ;;  %v811_v50 = vpop.f32.mrb[34].mxu0 }
 0x18d   : > { %828 = vst.msk [vmem:[%s1638_s19 + $0x58] sm:$0xff] %vm817_vm1, %v742_v33  ;;  %v572_v35 = vpop.f32.mrb[12].mxu1  ;;  %v813_v52 = vpop.f32.mrb[35].mxu0 }
 0x18e   : > { %v746_v36 = vadd.f32 %v745_v57, %v572_v35  ;;  %v574_v37 = vpop.f32.mrb[13].mxu1 }
 0x18f   : > { %v748_v39 = vadd.f32 %v747_v58, %v574_v37 }
 0x190   : > { %829 = vst [vmem:[%s1638_s19 + $0x60] sm:$0xff] %v746_v36 }
 0x191   : > { %830 = vst.msk [vmem:[%s1638_s19 + $0x68] sm:$0xff] %vm817_vm1, %v748_v39  ;;  %v578_v41 = vpop.f32.mrb[14].mxu1 }
 0x192   : > { %v752_v42 = vadd.f32 %v1625_v59, %v578_v41  ;;  %v580_v43 = vpop.f32.mrb[15].mxu1 }
 0x193   : > { %v754_v45 = vadd.f32 %v1627_v60, %v580_v43 }
 0x194   : > { %831 = vst [vmem:[%s1638_s19 + $0x70] sm:$0xff] %v752_v42 }
 0x195   : > { %832 = vst.msk [vmem:[%s1638_s19 + $0x78] sm:$0xff] %vm817_vm1, %v754_v45  ;;  %v584_v47 = vpop.f32.mrb[16].mxu1 }
 0x196   : > { %v758_v48 = vadd.f32 %v1630_v61, %v584_v47  ;;  %v586_v49 = vpop.f32.mrb[17].mxu1 }
 0x197   : > { %v760_v51 = vadd.f32 %v1632_v62, %v586_v49 }
 0x198   : > { %833 = vst [vmem:[%s1638_s19 + $0x80] sm:$0xff] %v758_v48 }
 0x199   : > { %834 = vst.msk [vmem:[%s1638_s19 + $0x88] sm:$0xff] %vm817_vm1, %v760_v51  ;;  %v590_v53 = vpop.f32.mrb[18].mxu1 }
 0x19a   : > { %v764_v54 = vadd.f32 %v1634_v3, %v590_v53  ;;  %v592_v55 = vpop.f32.mrb[19].mxu1 }
 0x19b   : > { %v766_v56 = vadd.f32 %v1636_v5, %v592_v55 }
 0x19c   : > { %835 = vst [vmem:[%s1638_s19 + $0x90] sm:$0xff] %v764_v54 }
 0x19d   : > { %836 = vst.msk [vmem:[%s1638_s19 + $0x98] sm:$0xff] %vm817_vm1, %v766_v56  ;;  %v596_v57 = vpop.f32.mrb[20].mxu1 }
 0x19e   : > { %v770_v58 = vadd.f32 %v1643_v9, %v596_v57  ;;  %v598_v59 = vpop.f32.mrb[21].mxu1 }
 0x19f   : > { %v772_v60 = vadd.f32 %v1645_v11, %v598_v59 }
 0x1a0   : > { %837 = vst [vmem:[%s1638_s19 + $0xa0] sm:$0xff] %v770_v58 }
 0x1a1   : > { %838 = vst.msk [vmem:[%s1638_s19 + $0xa8] sm:$0xff] %vm817_vm1, %v772_v60  ;;  %v602_v61 = vpop.f32.mrb[22].mxu1 }
 0x1a2   : > { %v776_v62 = vadd.f32 %v1650_v15, %v602_v61  ;;  %v604_v63 = vpop.f32.mrb[23].mxu1 }
 0x1a3   : > { %v778_v1 = vadd.f32 %v1652_v17, %v604_v63 }
 0x1a4   : > { %839 = vst [vmem:[%s1638_s19 + $0xb0] sm:$0xff] %v776_v62 }
 0x1a5   : > { %840 = vst.msk [vmem:[%s1638_s19 + $0xb8] sm:$0xff] %vm817_vm1, %v778_v1  ;;  %v608_v2 = vpop.f32.mrb[24].mxu1 }
 0x1a6   : > { %v782_v3 = vadd.f32 %v1657_v21, %v608_v2  ;;  %v610_v4 = vpop.f32.mrb[25].mxu1 }
 0x1a7   : > { %v784_v5 = vadd.f32 %v1659_v23, %v610_v4 }
 0x1a8   : > { %841 = vst [vmem:[%s1638_s19 + $0xc0] sm:$0xff] %v782_v3 }
 0x1a9   : > { %842 = vst.msk [vmem:[%s1638_s19 + $0xc8] sm:$0xff] %vm817_vm1, %v784_v5  ;;  %v614_v6 = vpop.f32.mrb[26].mxu1 }
 0x1aa   : > { %v788_v7 = vadd.f32 %v787_v27, %v614_v6  ;;  %v616_v8 = vpop.f32.mrb[27].mxu1 }
 0x1ab   : > { %v790_v9 = vadd.f32 %v789_v29, %v616_v8 }
 0x1ac   : > { %843 = vst [vmem:[%s1638_s19 + $0xd0] sm:$0xff] %v788_v7 }
 0x1ad   : > { %844 = vst.msk [vmem:[%s1638_s19 + $0xd8] sm:$0xff] %vm817_vm1, %v790_v9  ;;  %v620_v10 = vpop.f32.mrb[28].mxu1 }
 0x1ae   : > { %v794_v11 = vadd.f32 %v793_v0, %v620_v10  ;;  %v622_v12 = vpop.f32.mrb[29].mxu1 }
 0x1af   : > { %v796_v13 = vadd.f32 %v795_v34, %v622_v12 }
 0x1b0   : > { %845 = vst [vmem:[%s1638_s19 + $0xe0] sm:$0xff] %v794_v11 }
 0x1b1   : > { %846 = vst.msk [vmem:[%s1638_s19 + $0xe8] sm:$0xff] %vm817_vm1, %v796_v13  ;;  %v626_v14 = vpop.f32.mrb[30].mxu1 }
 0x1b2   : > { %v800_v15 = vadd.f32 %v799_v38, %v626_v14  ;;  %v628_v16 = vpop.f32.mrb[31].mxu1 }
 0x1b3   : > { %v802_v17 = vadd.f32 %v801_v40, %v628_v16 }
 0x1b4   : > { %847 = vst [vmem:[%s1638_s19 + $0xf0] sm:$0xff] %v800_v15 }
 0x1b5   : > { %848 = vst.msk [vmem:[%s1638_s19 + $0xf8] sm:$0xff] %vm817_vm1, %v802_v17  ;;  %v632_v18 = vpop.f32.mrb[32].mxu1 }
 0x1b6   : > { %v806_v19 = vadd.f32 %v805_v44, %v632_v18  ;;  %v634_v20 = vpop.f32.mrb[33].mxu1 }
 0x1b7   : > { %v808_v21 = vadd.f32 %v807_v46, %v634_v20 }
 0x1b8   : > { %849 = vst [vmem:[%s1638_s19 + $0x100] sm:$0xff] %v806_v19 }
 0x1b9   : > { %850 = vst.msk [vmem:[%s1638_s19 + $0x108] sm:$0xff] %vm817_vm1, %v808_v21  ;;  %v638_v22 = vpop.f32.mrb[34].mxu1 }
 0x1ba   : > { %v812_v23 = vadd.f32 %v811_v50, %v638_v22  ;;  %v640_v24 = vpop.f32.mrb[35].mxu1 }
 0x1bb   : > { %v814_v25 = vadd.f32 %v813_v52, %v640_v24 }
 0x1bc   : > { %851 = vst [vmem:[%s1638_s19 + $0x110] sm:$0xff] %v812_v23 }
 0x1bd   : > { %852 = vst.msk [vmem:[%s1638_s19 + $0x118] sm:$0xff] %vm817_vm1, %v814_v25 }
 0x1be   : > { %1275 = shalt.err (!%p1272_p5)
}
 0x1bf   : > { %s1276_s18 = scalar_lea.hbm %s1720_s6, 4608  ;;  %s1280_s15 = scalar_lea.hbm %s1776_s2, 9216 }
 0x1c0   : > { %p1277_p9 = scmp.ne.s32.totalorder %s1720_s6, %s1276_s18  ;;  %p1281_p3 = scmp.lt.u32.totalorder %s1720_s6, %s1776_s2 }
 0x1c1   : > { %p1282_p7 = scmp.lt.u32.totalorder %s1280_s15, %s1276_s18  ;;  %p1284_p4 = scmp.lt.u32.totalorder %s1276_s18, %s1720_s6 }
 0x1c2   : > { %p1278_p1 = pnand %p1277_p9, %p1467_p10 }
 0x1c3   : > { %p1283_p11 = por %p1282_p7, %p1281_p3 }
 0x1c4   : > { %p1279_p2 = pneg %p1278_p1 }
 0x1c5   : > { %p1285_p6 = por %p1284_p4, %p1283_p11 }
 0x1c7   : > { %p1286_p8 = pnand %p1285_p6, %p1279_p2 }
 0x1c9   : > { %1289 = shalt.err (!%p1286_p8)
}
 0x1ca   : > { %s1358_s17 = smov 256   ;;  %s1359_s19 = smov 16  }
 0x1cb   : > { %1129 = dma.vmem_to_hbm [thread:$0]  (%p1467_p10), %s1722_s30, 4608, %s1720_s6, %s854_s12, %s1358_s17, %s1358_s17, %s1359_s19  }
 0x1cc PF: > { %s887_s21 = sand.u32 1, %s1328_s9   ;;  %p1793_p12 = scmp.ne.s32.totalorder %s1784_s20, 0 }
 0x1cd   : > { %p1794_p13 = scmp.ge.s32.totalorder %s1348_s14, 2  ;;  %s888_s3 = scalar_lea.sflag [#allocation4], %s887_s21 }
 0x1cf   : > { %p1140_p0 = pnand %p1794_p13, %p1793_p12 }
 0x1d1   : > { %1323 = dma.done.wait (!%p1140_p0), %s888_s3, 4608  }
 0x1d2   : > { %1325 = vsyncadd (!%p1140_p0), %s888_s3, 4294962688  ;;  %s19_s14 = sadd.s32 1, %s1348_s14   ;;  %s1795_s9 = smov %s1332_s10 }
 0x1d3   : > { %p16_p5 = scmp.ge.s32.totalorder %s19_s14, 4   ;;  %s1796_s10 = smov %s1336_s11 }
 0x1d4   : > { %s1797_s11 = smov %s1476_s28  ;;  %s1798_s12 = smov %s1344_s13 }
 0x1d5   : > { %s1799_s13 = smov %s1801_s25  ;;  %18 = sbr.rel (!%p16_p5) target bundleno = 7 (0x7), region = 79 }
 0x1dc   :  { %893 = vsyncpa [#allocation3], 1 }
 0x1dd   :  { %895 = vsyncpa [#allocation3 + $0x1], 1 }
 0x1de   :  { %896 = vsyncpa [#allocation6], 1 }
 0x1df   :  { %898 = vsyncpa [#allocation6 + $0x1], 1 }
 0x1e0   :  { %899 = vsyncpa [#allocation4], 1 }
 0x1e1   :  { %901 = vsyncpa [#allocation4 + $0x1], 1 }

</bundles_post_ra>
